<compile_context>
chip_gen: v7x
topology: tpu7x:2x2x1
jax: 0.10.0
libtpu: 0.0.40
codegen_flags: <defaults>
</compile_context>

<pallas_src>
import jax
import jax.numpy as jnp
from jax import lax
from jax.experimental import pallas as pl
from jax.experimental.pallas import tpu as pltpu

HIDDEN = 256     # fc1 / fc2 width (nn.Linear(..., 256))
TB_MAX = 1024    # max batch-tile rows; per-step VMEM stays in the low-MB range


def _round_up(x, m):
    return (x + m - 1) // m * m


def _cdiv(a, b):
    return -(-a // b)


def _choose_tile(batch):
    """Static batch-tile size & tile count."""
    b16 = _round_up(max(batch, 1), 16)          # 16-row alignment (bf16 h1 packing)
    if b16 <= 256:
        return b16, 1                           # single tile; block == full dims
    # >= 2 tiles so the "parallel" axis shards across both v7x TensorCores;
    # tile is a multiple of 128 so the lane-dense (1, tb) output block is aligned.
    tb = min(TB_MAX, _round_up(_cdiv(b16, 2), 128))
    return tb, _cdiv(b16, tb)


def _qfunc_kernel(x_ref, w1_ref, b1_ref, w2_ref, b2_ref, w3_ref, b3_ref, q_ref):
    # x_ref : [TB, D]   f32  (D = state_dim + act_dim, no lane padding)
    # w1_ref: [D, 256]  f32     b1_ref: [1, 256] f32
    # w2_ref: [256,256] bf16    b2_ref: [1, 256] f32
    # w3_ref: [1, 256]  f32     b3_ref: [1, 1]   f32
    # q_ref : [1, TB]   f32  (lane-dense output row)
    # fc1: K = D is tiny -> keep f32 operands (negligible MXU cost, no rounding error).
    h1 = jnp.dot(x_ref[...], w1_ref[...], preferred_element_type=jnp.float32) + b1_ref[...]
    h1 = jnp.maximum(h1, 0.0).astype(jnp.bfloat16)   # ReLU in f32; bf16 only as MXU operand
    # fc2: the real MXU work -- bf16 operands, f32 accumulation; bias/ReLU in f32 (VPU).
    h2 = jnp.dot(h1, w2_ref[...], preferred_element_type=jnp.float32) + b2_ref[...]
    h2 = jnp.maximum(h2, 0.0)
    # Q head: w3_row @ h2^T -> [1, TB] lane-dense row (avoids 1-lane masked stores).
    q = lax.dot_general(w3_ref[...], h2, (((1,), (1,)), ((), ())),
                        preferred_element_type=jnp.float32)
    q_ref[...] = q + b3_ref[...]


def prepare_params(params):
    """One-time parameter prep (outside the hot path): 2-D biases / Q-head row;
    bf16 only for the 256x256 fc2 weight."""
    w1, b1, w2, b2, w3, b3 = params
    return (w1.astype(jnp.float32),
            b1.reshape(1, HIDDEN).astype(jnp.float32),
            w2.astype(jnp.bfloat16),
            b2.reshape(1, HIDDEN).astype(jnp.float32),
            w3.reshape(1, HIDDEN).astype(jnp.float32),
            jnp.asarray(b3, jnp.float32).reshape(1, 1))


def mlp_q_forward(s, a, prepped):
    """Pallas forward of MLPQFunction. Returns q of shape [batch] (squeezed last dim)."""
    w1, b1, w2, b2, w3, b3 = prepped
    B = s.shape[0]
    D = w1.shape[0]                               # state_dim + act_dim (16 here)

    # cat([s, a], -1): a tiny [B, D] f32 buffer -- no lane padding, no bf16 copy.
    x = jnp.concatenate([s, a], axis=-1).astype(jnp.float32)

    tb, n_tiles = _choose_tile(B)
    b_pad = tb * n_tiles
    if b_pad != B:                                # static; pads only batch rows
        x = jnp.pad(x, ((0, b_pad - B), (0, 0)))

    def const(shape):                             # weights: fetched once, VMEM-resident
        return pl.BlockSpec(shape, lambda i: (0,) * len(shape))

    q = pl.pallas_call(
        _qfunc_kernel,
        out_shape=jax.ShapeDtypeStruct((1, b_pad), jnp.float32),
        grid=(n_tiles,),
        in_specs=[
            pl.BlockSpec((tb, D), lambda i: (i, 0)),        # streamed per batch tile
            const((D, HIDDEN)), const((1, HIDDEN)),
            const((HIDDEN, HIDDEN)), const((1, HIDDEN)),
            const((1, HIDDEN)), const((1, 1)),
        ],
        out_specs=pl.BlockSpec((1, tb), lambda i: (0, i)),  # lane-dense output row
        compiler_params=pltpu.CompilerParams(
            dimension_semantics=("parallel",)),             # megacore sharding on v7x
    )(x, w1, b1, w2, b2, w3, b3)

    return q[0, :B]


def init_params(key, state_dim, act_dim):
    """Deterministic PyTorch-style uniform init; weights stored as [in, out]."""
    def linear(k, fan_in, fan_out):
        kw, kb = jax.random.split(k)
        bound = 1.0 / jnp.sqrt(fan_in)
        w = jax.random.uniform(kw, (fan_in, fan_out), jnp.float32, -bound, bound)
        b = jax.random.uniform(kb, (fan_out,), jnp.float32, -bound, bound)
        return w, b

    k1, k2, k3 = jax.random.split(key, 3)
    w1, b1 = linear(k1, state_dim + act_dim, HIDDEN)
    w2, b2 = linear(k2, HIDDEN, HIDDEN)
    w3, b3 = linear(k3, HIDDEN, 1)
    return (w1, b1, w2, b2, w3.reshape(HIDDEN, 1), b3.reshape(1, 1))


def mlp_q_reference(s, a, params):
    w1, b1, w2, b2, w3, b3 = params
    x = jnp.concatenate([s, a], axis=-1)
    h1 = jnp.maximum(x @ w1 + b1, 0.0)
    h2 = jnp.maximum(h1 @ w2 + b2, 0.0)
    q = h2 @ w3 + b3
    return jnp.squeeze(q, -1)


if __name__ == "__main__":
    state_dim, act_dim, batch = 12, 4, 8

    key = jax.random.PRNGKey(0)
    kp, ks, ka, ks2, ka2 = jax.random.split(key, 5)
    params = init_params(kp, state_dim, act_dim)
    prepped = prepare_params(params)          # one-time prep, outside the hot path

    fwd = jax.jit(mlp_q_forward)

    # Small (inference-sized) batch: single-tile path.
    s = jax.random.normal(ks, (batch, state_dim), jnp.float32)
    a = jax.random.normal(ka, (batch, act_dim), jnp.float32)
    q = jax.block_until_ready(fwd(s, a, prepped))
    q_ref = mlp_q_reference(s, a, params)
    assert q.shape == (batch,), q.shape
    # Only the 256x256 fc2 matmul uses bf16 operands (everything else is f32).
    assert jnp.allclose(q, q_ref, atol=2e-2, rtol=2e-2), (q, q_ref)

    # Larger batch: exercises the multi-tile "parallel" grid, batch padding and
    # the lane-dense multi-block output row.
    big = 384
    s2 = jax.random.normal(ks2, (big, state_dim), jnp.float32)
    a2 = jax.random.normal(ka2, (big, act_dim), jnp.float32)
    q2 = jax.block_until_ready(fwd(s2, a2, prepped))
    q2_ref = mlp_q_reference(s2, a2, params)
    assert q2.shape == (big,), q2.shape
    assert jnp.allclose(q2, q2_ref, atol=2e-2, rtol=2e-2), float(jnp.max(jnp.abs(q2 - q2_ref)))

    print("KERNEL_OK")
</pallas_src>

<mosaic_0001>
module attributes {stable_mosaic.version = 11 : i64} {
  func.func @_qfunc_kernel(%arg0: i32, %arg1: memref<16x16xf32, #tpu.memory_space<vmem>>, %arg2: memref<16x256xf32, #tpu.memory_space<vmem>>, %arg3: memref<1x256xf32, #tpu.memory_space<vmem>>, %arg4: memref<256x256xbf16, #tpu.memory_space<vmem>>, %arg5: memref<1x256xf32, #tpu.memory_space<vmem>>, %arg6: memref<1x256xf32, #tpu.memory_space<vmem>>, %arg7: memref<1x1xf32, #tpu.memory_space<vmem>>, %arg8: memref<1x16xf32, #tpu.memory_space<vmem>>) attributes {dimension_semantics = [#tpu.dimension_semantics<parallel>], iteration_bounds = array<i64: 1>, scalar_prefetch = 0 : i64, scratch_operands = 0 : i64, tpu.core_type = #tpu.core_type<tc>, window_params = [{transform_indices = @transform_0, window_bounds = array<i64: 16, 16>}, {pipeline_mode = #tpu.pipeline_mode<synchronous>, transform_indices = @transform_1, window_bounds = array<i64: 16, 256>}, {pipeline_mode = #tpu.pipeline_mode<synchronous>, transform_indices = @transform_2, window_bounds = array<i64: 1, 256>}, {pipeline_mode = #tpu.pipeline_mode<synchronous>, transform_indices = @transform_3, window_bounds = array<i64: 256, 256>}, {pipeline_mode = #tpu.pipeline_mode<synchronous>, transform_indices = @transform_4, window_bounds = array<i64: 1, 256>}, {pipeline_mode = #tpu.pipeline_mode<synchronous>, transform_indices = @transform_5, window_bounds = array<i64: 1, 256>}, {pipeline_mode = #tpu.pipeline_mode<synchronous>, transform_indices = @transform_6, window_bounds = array<i64: 1, 1>}, {transform_indices = @transform_7, window_bounds = array<i64: 1, 16>}]} {
    %c0 = arith.constant 0 : index
    %c0_0 = arith.constant 0 : index
    %0 = vector.load %arg1[%c0, %c0_0] : memref<16x16xf32, #tpu.memory_space<vmem>>, vector<16x16xf32>
    %c0_1 = arith.constant 0 : index
    %c0_2 = arith.constant 0 : index
    %1 = vector.load %arg2[%c0_1, %c0_2] : memref<16x256xf32, #tpu.memory_space<vmem>>, vector<16x256xf32>
    %cst = arith.constant dense<0.000000e+00> : vector<16x256xf32>
    %2 = tpu.matmul %0, %1, %cst {dimension_numbers = #tpu.dot_dimension_numbers<[1], [0], [0], [1], [0, 0, 1, 1], [], []>} : vector<16x16xf32>, vector<16x256xf32>, vector<16x256xf32> -> vector<16x256xf32>
    %c0_3 = arith.constant 0 : index
    %c0_4 = arith.constant 0 : index
    %3 = vector.load %arg3[%c0_3, %c0_4] : memref<1x256xf32, #tpu.memory_space<vmem>>, vector<1x256xf32>
    %4 = vector.broadcast %3 : vector<1x256xf32> to vector<16x256xf32>
    %5 = arith.addf %2, %4 : vector<16x256xf32>
    %cst_5 = arith.constant 0.000000e+00 : f32
    %6 = vector.broadcast %cst_5 : f32 to vector<16x256xf32>
    %7 = arith.maximumf %5, %6 : vector<16x256xf32>
    %8 = arith.truncf %7 : vector<16x256xf32> to vector<16x256xbf16>
    %c0_6 = arith.constant 0 : index
    %c0_7 = arith.constant 0 : index
    %9 = vector.load %arg4[%c0_6, %c0_7] : memref<256x256xbf16, #tpu.memory_space<vmem>>, vector<256x256xbf16>
    %cst_8 = arith.constant dense<0.000000e+00> : vector<16x256xf32>
    %10 = tpu.matmul %8, %9, %cst_8 {dimension_numbers = #tpu.dot_dimension_numbers<[1], [0], [0], [1], [0, 0, 1, 1], [], []>} : vector<16x256xbf16>, vector<256x256xbf16>, vector<16x256xf32> -> vector<16x256xf32>
    %c0_9 = arith.constant 0 : index
    %c0_10 = arith.constant 0 : index
    %11 = vector.load %arg5[%c0_9, %c0_10] : memref<1x256xf32, #tpu.memory_space<vmem>>, vector<1x256xf32>
    %12 = vector.broadcast %11 : vector<1x256xf32> to vector<16x256xf32>
    %13 = arith.addf %10, %12 : vector<16x256xf32>
    %cst_11 = arith.constant 0.000000e+00 : f32
    %14 = vector.broadcast %cst_11 : f32 to vector<16x256xf32>
    %15 = arith.maximumf %13, %14 : vector<16x256xf32>
    %c0_12 = arith.constant 0 : index
    %c0_13 = arith.constant 0 : index
    %16 = vector.load %arg6[%c0_12, %c0_13] : memref<1x256xf32, #tpu.memory_space<vmem>>, vector<1x256xf32>
    %cst_14 = arith.constant dense<0.000000e+00> : vector<1x16xf32>
    %17 = tpu.matmul %16, %15, %cst_14 {dimension_numbers = #tpu.dot_dimension_numbers<[1], [1], [0], [0], [0, 0, 1, 0], [], []>} : vector<1x256xf32>, vector<16x256xf32>, vector<1x16xf32> -> vector<1x16xf32>
    %c0_15 = arith.constant 0 : index
    %c0_16 = arith.constant 0 : index
    %18 = vector.load %arg7[%c0_15, %c0_16] : memref<1x1xf32, #tpu.memory_space<vmem>>, vector<1x1xf32>
    %19 = vector.broadcast %18 : vector<1x1xf32> to vector<1x16xf32>
    %20 = arith.addf %17, %19 : vector<1x16xf32>
    %c0_17 = arith.constant 0 : index
    %c0_18 = arith.constant 0 : index
    %21 = vector.load %arg8[%c0_17, %c0_18] : memref<1x16xf32, #tpu.memory_space<vmem>>, vector<1x16xf32>
    tpu.vector_store %arg8[%c0_17, %c0_18], %20 {strides = array<i32>} : memref<1x16xf32, #tpu.memory_space<vmem>>, vector<1x16xf32>,
    return
  }
  func.func @transform_0(%arg0: i32) -> (i32, i32) {
    %c0_i32 = arith.constant 0 : i32
    %c0_i32_0 = arith.constant 0 : i32
    return %arg0, %c0_i32 : i32, i32
  }
  func.func @transform_1(%arg0: i32) -> (i32, i32) {
    %c0_i32 = arith.constant 0 : i32
    %c0_i32_0 = arith.constant 0 : i32
    %c0_i32_1 = arith.constant 0 : i32
    return %c0_i32, %c0_i32_0 : i32, i32
  }
  func.func @transform_2(%arg0: i32) -> (i32, i32) {
    %c0_i32 = arith.constant 0 : i32
    %c0_i32_0 = arith.constant 0 : i32
    %c0_i32_1 = arith.constant 0 : i32
    return %c0_i32, %c0_i32_0 : i32, i32
  }
  func.func @transform_3(%arg0: i32) -> (i32, i32) {
    %c0_i32 = arith.constant 0 : i32
    %c0_i32_0 = arith.constant 0 : i32
    %c0_i32_1 = arith.constant 0 : i32
    return %c0_i32, %c0_i32_0 : i32, i32
  }
  func.func @transform_4(%arg0: i32) -> (i32, i32) {
    %c0_i32 = arith.constant 0 : i32
    %c0_i32_0 = arith.constant 0 : i32
    %c0_i32_1 = arith.constant 0 : i32
    return %c0_i32, %c0_i32_0 : i32, i32
  }
  func.func @transform_5(%arg0: i32) -> (i32, i32) {
    %c0_i32 = arith.constant 0 : i32
    %c0_i32_0 = arith.constant 0 : i32
    %c0_i32_1 = arith.constant 0 : i32
    return %c0_i32, %c0_i32_0 : i32, i32
  }
  func.func @transform_6(%arg0: i32) -> (i32, i32) {
    %c0_i32 = arith.constant 0 : i32
    %c0_i32_0 = arith.constant 0 : i32
    %c0_i32_1 = arith.constant 0 : i32
    return %c0_i32, %c0_i32_0 : i32, i32
  }
  func.func @transform_7(%arg0: i32) -> (i32, i32) {
    %c0_i32 = arith.constant 0 : i32
    %c0_i32_0 = arith.constant 0 : i32
    return %c0_i32, %arg0 : i32, i32
  }
}

</mosaic_0001>

<bundles_post_ra>
// kernel: mlp_q_forward.1
= control target key start
LH: loop header
LB: loop body
LE: loop exit
PB: predicated region body
PF: predicated region fallthrough
CT: control target
= control target key end

     0   :  { %s710_s0 = inlined_call_operand.vmem [shape: f32[16,16], index: 0, kind: input, shape index: {}]   ;;  %s711_s1 = inlined_call_operand.vmem [shape: f32[16,256], index: 1, kind: input, shape index: {}]   ;;  %s712_s2 = inlined_call_operand.vmem [shape: f32[1,256], index: 2, kind: input, shape index: {}]   ;;  %s713_s3 = inlined_call_operand.hbm [shape: bf16[256,256], index: 3, kind: input, shape index: {}]   ;;  %s714_s4 = inlined_call_operand.vmem [shape: f32[1,256], index: 4, kind: input, shape index: {}]   ;;  %s715_s5 = inlined_call_operand.vmem [shape: f32[1,256], index: 5, kind: input, shape index: {}]   ;;  %s716_s6 = inlined_call_operand.<no memory space> [shape: f32[1,1], index: 6, kind: input, shape index: {}]   ;;  %s717_s7 = inlined_call_operand.vmem [shape: f32[1,16], index: 7, kind: output, shape index: {}]  }
   0x1   :  { %v12_v0 = vstv %s716_s6 }
   0x2   :  { %13 = vst [vmem:[#allocation2] sm:$0x1] %v12_v0 }
   0x3   :  { %14 = vsyncpa [#allocation4], 0  ;;  %s620_s26 = smov [#allocation3]   ;;  %s596_s30 = scalar_lea.hbm %s713_s3, 4096 }
   0x4   :  { %s26_s27 = sshll.u32 %s620_s26, 4  ;;  %p597_p0 = scmp.ne.s32.totalorder %s713_s3, %s596_s30  ;;  %s27_s27 = int_to_ptr.vmem [resolvable:$true] %s26_s27 }
   0x5   :  { %p600_p1 = scmp.lt.u32.totalorder %s596_s30, %s713_s3 }
   0x7   :  { %p602_p2 = pnand %p600_p1, %p597_p0 }
   0x9   :  { %605 = shalt.err (!%p602_p2)
}
   0xa   :  { %s606_s6 = scalar_lea.vmem %s27_s27, 4096  ;;  %p611_p4 = scmp.lt.s32.totalorder %s27_s27, %s27_s27 }
   0xb   :  { %p607_p3 = scmp.ne.s32.totalorder %s27_s27, %s606_s6  ;;  %p612_p5 = scmp.lt.s32.totalorder %s606_s6, %s606_s6 }
   0xd   :  { %p613_p6 = por %p612_p5, %p611_p4 }
   0xf   :  { %p614_p7 = pnand %p613_p6, %p607_p3 }
  0x11   :  { %617 = shalt.err (!%p614_p7)
}
  0x12   :  { %s621_s12 = smov 128   ;;  %s622_s13 = smov 8  }
  0x13   :  { %32 = dma.hbm_to_vmem [thread:$0]  %s713_s3, 4096, %s27_s27, [#allocation4], %s621_s12, %s621_s12, %s622_s13  }
  0x14   :  { %618 = dma.done.wait [#allocation4], 4096  }
  0x15   :  { %619 = vsyncadd [#allocation4], 4294963200  ;;  %v623_v1 = vmov 0.0   ;;  %v45_v2 = vld [vmem:[%s711_s1 + $0x8] sm:$0xff]  ;;  %v47_v3 = vld [vmem:[%s711_s1 + $0x18] sm:$0xff]  ;;  %vm60_vm0 = vcmask 130048   ;;  %v50_v42 = vlaneseq }
  0x16   :  { %131 = vmatprep.mubr.f32.mxu0 %v623_v1  ;;  %v44_v4 = vld [vmem:[%s711_s1] sm:$0xff]  ;;  %v534_v5 = vpack.c.bf16 %v47_v3, %v45_v2  ;;  %v46_v6 = vld [vmem:[%s711_s1 + $0x10] sm:$0xff]  ;;  %v43_v14 = vld [vmem:[%s710_s0 + $0x8] sm:$0xff]  ;;  %v624_v2 = vmov 0   ;;  %vm493_vm1 = vcmask 122880  }
  0x17   :  { %v536_v7 = vpack.c.bf16 %v46_v6, %v44_v4  ;;  %v548_v8 = vld [vmem:[#allocation3 + $0x4] ss:$8 sps:$4 sm:$0xff]   ;;  %v550_v9 = vld [vmem:[#allocation3] ss:$8 sps:$4 sm:$0xff]   ;;  %v551_v11 = vld [vmem:[#allocation3 + $0x14] ss:$8 sps:$4 sm:$0xff]   ;;  %547 = vset.pattern.permute.xlu0 %v624_v2 }
  0x18   :  { %535 = vmatprep.subr.bf16.mxu0 %v534_v5  ;;  %v42_v10 = vld [vmem:[%s710_s0] sm:$0xff]  ;;  %354 = vmatprep.subr.bf16.mxu1 %v548_v8  ;;  %v553_v12 = vld [vmem:[#allocation3 + $0x10] ss:$8 sps:$4 sm:$0xff]   ;;  %v51_v43 = vshrl.u32 %v50_v42, 7 }
  0x19   :  { %537 = vmatpush1.bf16.msra.mxu0 %v536_v7  ;;  %355 = vmatpush1.bf16.msra.mxu1 %v550_v9  ;;  %v554_v13 = vld [vmem:[#allocation3 + $0x24] ss:$8 sps:$4 sm:$0xff]   ;;  %v556_v15 = vld [vmem:[#allocation3 + $0x20] ss:$8 sps:$4 sm:$0xff]   ;;  %v557_v16 = vld [vmem:[#allocation3 + $0x34] ss:$8 sps:$4 sm:$0xff]  }
  0x1a   :  { %356 = vmatprep.subr.bf16.mxu1 %v551_v11  ;;  %v559_v17 = vld [vmem:[#allocation3 + $0x30] ss:$8 sps:$4 sm:$0xff]   ;;  %v560_v18 = vld [vmem:[#allocation3 + $0x44] ss:$8 sps:$4 sm:$0xff]   ;;  %v562_v19 = vld [vmem:[#allocation3 + $0x40] ss:$8 sps:$4 sm:$0xff]  }
  0x1b   :  { %v563_v20 = vld [vmem:[#allocation3 + $0x54] ss:$8 sps:$4 sm:$0xff]   ;;  %v565_v21 = vld [vmem:[#allocation3 + $0x50] ss:$8 sps:$4 sm:$0xff]   ;;  %v566_v22 = vld [vmem:[#allocation3 + $0x64] ss:$8 sps:$4 sm:$0xff]  }
  0x1c   :  { %500 = vmatmul.mubr.msk.f32.vlgmr.msra.gmra.mrb[0].mxu0 %vm60_vm0, %v42_v10  ;;  %v568_v23 = vld [vmem:[#allocation3 + $0x60] ss:$8 sps:$4 sm:$0xff]   ;;  %v569_v24 = vld [vmem:[#allocation3 + $0x74] ss:$8 sps:$4 sm:$0xff]   ;;  %v571_v25 = vld [vmem:[#allocation3 + $0x70] ss:$8 sps:$4 sm:$0xff]  }
  0x1d   :  { %137 = vmatprep.mubr.f32.mxu0 %v623_v1  ;;  %357 = vmatpush1.bf16.msra.mxu1 %v553_v12  ;;  %v572_v26 = vld [vmem:[#allocation3 + $0x84] ss:$8 sps:$4 sm:$0xff]   ;;  %v574_v27 = vld [vmem:[#allocation3 + $0x80] ss:$8 sps:$4 sm:$0xff]   ;;  %v575_v28 = vld [vmem:[#allocation3 + $0x94] ss:$8 sps:$4 sm:$0xff]  }
  0x1e   :  { %358 = vmatprep.subr.bf16.mxu1 %v554_v13  ;;  %v577_v29 = vld [vmem:[#allocation3 + $0x90] ss:$8 sps:$4 sm:$0xff]   ;;  %v578_v30 = vld [vmem:[#allocation3 + $0xa4] ss:$8 sps:$4 sm:$0xff]   ;;  %v580_v31 = vld [vmem:[#allocation3 + $0xa0] ss:$8 sps:$4 sm:$0xff]  }
  0x1f   :  { %v581_v32 = vld [vmem:[#allocation3 + $0xb4] ss:$8 sps:$4 sm:$0xff]   ;;  %v583_v33 = vld [vmem:[#allocation3 + $0xb0] ss:$8 sps:$4 sm:$0xff]   ;;  %v584_v34 = vld [vmem:[#allocation3 + $0xc4] ss:$8 sps:$4 sm:$0xff]  }
  0x20   :  { %501 = vmatmul.mubr.msk.f32.gmra.mrb[2].mxu0 %vm60_vm0, %v43_v14  ;;  %v586_v35 = vld [vmem:[#allocation3 + $0xc0] ss:$8 sps:$4 sm:$0xff]   ;;  %v587_v36 = vld [vmem:[#allocation3 + $0xd4] ss:$8 sps:$4 sm:$0xff]   ;;  %v589_v37 = vld [vmem:[#allocation3 + $0xd0] ss:$8 sps:$4 sm:$0xff]  }
  0x21   :  { %359 = vmatpush1.bf16.msra.mxu1 %v556_v15  ;;  %v590_v38 = vld [vmem:[#allocation3 + $0xe4] ss:$8 sps:$4 sm:$0xff]   ;;  %v592_v39 = vld [vmem:[#allocation3 + $0xe0] ss:$8 sps:$4 sm:$0xff]   ;;  %v593_v40 = vld [vmem:[#allocation3 + $0xf4] ss:$8 sps:$4 sm:$0xff]  }
  0x22   :  { %360 = vmatprep.subr.bf16.mxu1 %v557_v16  ;;  %v595_v41 = vld [vmem:[#allocation3 + $0xf0] ss:$8 sps:$4 sm:$0xff]   ;;  %v52_v44 = vsub.s32 0, %v51_v43  ;;  %v48_v45 = vld [vmem:[%s712_s2] sm:$0x3]  ;;  %v56_v46 = vsub.s32 1, %v51_v43 }
  0x23   :  { %v401_v63 = vld [vmem:[%s715_s5] sm:$0x3] }
  0x24   :  { %v53_v47 = vrot.slane %v48_v45, %v52_v44  ;;  %v57_v49 = vrot.slane %v48_v45, %v56_v46  ;;  %v420_v0 = vrot.slane %v401_v63, %v56_v46  ;;  %v402_v1 = vld [vmem:[#allocation2] sm:$0x1] }
  0x25   :  { %361 = vmatpush1.bf16.msra.mxu1 %v559_v17  ;;  %405 = vperm.xlu0 %547, %v402_v1   ;;  %v182_v3 = vld [vmem:[%s714_s4] sm:$0x3] }
  0x26   :  { %362 = vmatprep.subr.bf16.mxu1 %v560_v18  ;;  %487 = vmatprep.mubr.f32.mxu0 %v420_v0  ;;  %v187_v4 = vrot.slane %v182_v3, %v52_v44  ;;  %v191_v5 = vrot.slane %v182_v3, %v56_v46 }
  0x29   :  { %363 = vmatpush1.bf16.msra.mxu1 %v562_v19 }
  0x2a   :  { %364 = vmatprep.subr.bf16.mxu1 %v563_v20  ;;  %v416_v20 = vrot.slane %v401_v63, %v52_v44 }
  0x2d   :  { %365 = vmatpush1.bf16.msra.mxu1 %v565_v21 }
  0x2e   :  { %366 = vmatprep.subr.bf16.mxu1 %v566_v22 }
  0x31   :  { %367 = vmatpush1.bf16.msra.mxu1 %v568_v23 }
  0x32   :  { %368 = vmatprep.subr.bf16.mxu1 %v569_v24 }
  0x35   :  { %369 = vmatpush1.bf16.msra.mxu1 %v571_v25 }
  0x36   :  { %370 = vmatprep.subr.bf16.mxu1 %v572_v26 }
  0x39   :  { %371 = vmatpush1.bf16.msra.mxu1 %v574_v27 }
  0x3a   :  { %372 = vmatprep.subr.bf16.mxu1 %v575_v28 }
  0x3d   :  { %373 = vmatpush1.bf16.msra.mxu1 %v577_v29 }
  0x3e   :  { %374 = vmatprep.subr.bf16.mxu1 %v578_v30 }
  0x41   :  { %375 = vmatpush1.bf16.msra.mxu1 %v580_v31 }
  0x42   :  { %376 = vmatprep.subr.bf16.mxu1 %v581_v32 }
  0x45   :  { %377 = vmatpush1.bf16.msra.mxu1 %v583_v33 }
  0x46   :  { %378 = vmatprep.subr.bf16.mxu1 %v584_v34 }
  0x49   :  { %379 = vmatpush1.bf16.msra.mxu1 %v586_v35 }
  0x4a   :  { %380 = vmatprep.subr.bf16.mxu1 %v587_v36 }
  0x4d   :  { %381 = vmatpush1.bf16.msra.mxu1 %v589_v37 }
  0x4e   :  { %382 = vmatprep.subr.bf16.mxu1 %v590_v38 }
  0x51   :  { %383 = vmatpush1.bf16.msra.mxu1 %v592_v39 }
  0x52   :  { %384 = vmatprep.subr.bf16.mxu1 %v593_v40 }
  0x55   :  { %385 = vmatpush1.bf16.msra.mxu1 %v595_v41 }
  0xa4   :  { %v406_v21 = vpop.permute.xlu0 %405 }
  0xa5   :  { %v411_v22 = vrot.slane %v406_v21, %v52_v44 }
  0xef   :  { %v133_v48 = vpop.f32.mrb[0].mxu0 }
  0xf0   :  { %v135_v50 = vpop.f32.mrb[1].mxu0  ;;  %v134_v51 = vadd.f32 %v133_v48, %v53_v47 }
  0xf1   :  { %v136_v52 = vadd.f32 %v135_v50, %v57_v49 }
  0xf2   :  { %v144_v57 = vmax.f32 %v134_v51, 0.0 }
  0xf3   :  { %v139_v53 = vpop.f32.mrb[2].mxu0  ;;  %v145_v59 = vmax.f32 %v136_v52, 0.0 }
  0xf4   :  { %v140_v54 = vadd.f32 %v139_v53, %v53_v47  ;;  %v141_v55 = vpop.f32.mrb[3].mxu0 }
  0xf5   :  { %v142_v56 = vadd.f32 %v141_v55, %v57_v49 }
  0xf6   :  { %v146_v58 = vmax.f32 %v140_v54, 0.0 }
  0xf7   :  { %v147_v60 = vmax.f32 %v142_v56, 0.0 }
  0xf8   :  { %v148_v61 = vpack.c.bf16 %v146_v58, %v144_v57 }
  0xf9   :  { %v149_v62 = vpack.c.bf16 %v147_v60, %v145_v59 }
  0xfb   :  { %386 = vmatprep.mubr.bf16.mxu1 %v149_v62 }
  0xfc   :  { %387 = vmatmul.mubr.bf16.vlgmr.msra.gmra.mrb[0].mxu1 %v148_v61 }
 0x1cf   :  { %v388_v6 = vpop.f32.mrb[0].mxu1 }
 0x1d0   :  { %v389_v7 = vadd.f32 %v388_v6, %v187_v4  ;;  %v390_v8 = vpop.f32.mrb[1].mxu1 }
 0x1d1   :  { %v391_v9 = vadd.f32 %v390_v8, %v191_v5  ;;  %v392_v10 = vpop.f32.mrb[2].mxu1 }
 0x1d2   :  { %v393_v11 = vadd.f32 %v392_v10, %v187_v4  ;;  %v394_v12 = vpop.f32.mrb[3].mxu1  ;;  %v397_v14 = vmax.f32 %v389_v7, 0.0 }
 0x1d3   :  { %v395_v13 = vadd.f32 %v394_v12, %v191_v5  ;;  %v398_v16 = vmax.f32 %v391_v9, 0.0 }
 0x1d4   :  { %v399_v15 = vmax.f32 %v393_v11, 0.0 }
 0x1d5   :  { %v400_v17 = vmax.f32 %v395_v13, 0.0 }
 0x1d6   :  { %v540_v18 = vpack.c.bf16 %v399_v15, %v397_v14 }
 0x1d7   :  { %v538_v19 = vpack.c.bf16 %v400_v17, %v398_v16 }
 0x1d9   :  { %539 = vmatprep.subr.bf16.mxu0 %v538_v19 }
 0x1da   :  { %541 = vmatpush1.bf16.xpose.msra.mxu0 %v540_v18 }
 0x1e1   :  { %488 = vmatmul.mubr.f32.vlgmr.msra.gmra.mrb[4].mxu0 %v416_v20 }
 0x2b4   :  { %v489_v23 = vpop.f32.mrb[4].mxu0 }
 0x2b5   :  { %v490_v24 = vadd.f32 %v489_v23, %v411_v22  ;;  %v491_v25 = vpop.f32.mrb[5].mxu0 }
 0x2b7   :  { %494 = vst.msk [vmem:[%s717_s7] sm:$0x1] %vm493_vm1, %v490_v24 }
 0x2b8   :  { %499 = vsyncpa [#allocation4], 1 }

</bundles_post_ra>
